<compile_context>
chip_gen: v7x
topology: tpu7x:2x2x1
jax: 0.10.0
libtpu: 0.0.40
codegen_flags: <defaults>
</compile_context>

<pallas_src>
import jax
import jax.numpy as jnp
from jax.experimental import pallas as pl
from jax.experimental.pallas import tpu as pltpu

ACTION_SCALE = 1.0  # self.policy.action_scale


def _round_up(x, m):
    return (x + m - 1) // m * m


def pathwise_loss_kernel(stateT_ref, epsT_ref,
                         wcatT_ref, w2T_ref, wc1aT_ref, vec_ref,
                         loss_ref):
    # Static dims / packed-vector offsets (all Python ints derived from static shapes).
    H, A = wc1aT_ref.shape
    HP, AP = _round_up(H, 8), _round_up(A, 8)
    OFF_B1, OFF_BC1 = 0, HP
    OFF_B2, OFF_LS = 2 * HP, 2 * HP + AP
    OFF_BC2, OFF_WC2 = 2 * HP + 2 * AP, 2 * HP + 2 * AP + 8

    # ---- fused first-layer pass over state^T: one (2H,S)x(S,TM) MXU matmul feeds both
    #      the policy hidden layer and the critic's state term (all lane-dense in TM) ----
    sh = jnp.dot(wcatT_ref[...], stateT_ref[...],
                 preferred_element_type=jnp.float32)                    # [2H, TM]
    b1 = vec_ref[OFF_B1:OFF_B1 + H, :]                                  # [H, 1]
    h = jnp.tanh(sh[:H, :] + b1)                                        # policy hidden [H, TM]
    crit_s = sh[H:, :]                                                  # critic state pre-act

    # ---- policy mean / std and the reparameterized, clamped, scaled action ----
    b2 = vec_ref[OFF_B2:OFF_B2 + A, :]                                  # [A, 1]
    log_std = vec_ref[OFF_LS:OFF_LS + A, :]                             # [A, 1]
    mean = jnp.dot(w2T_ref[...], h, preferred_element_type=jnp.float32) + b2   # [A, TM]
    std = jnp.exp(log_std)                                              # EUP, once per tile
    action = jnp.clip(mean + std * epsT_ref[...], -1.0, 1.0) * ACTION_SCALE    # [A, TM]

    # ---- critic hidden layer: tiny-K matmul on the otherwise idle MXU ----
    bc1 = vec_ref[OFF_BC1:OFF_BC1 + H, :]                               # [H, 1]
    act_term = jnp.dot(wc1aT_ref[...], action,
                       preferred_element_type=jnp.float32)              # [H, TM]
    hc = jnp.tanh(crit_s + act_term + bc1)                              # [H, TM]

    # ---- critic head (N=1): VPU multiply + sublane reduce -> lane-dense [1, TM] ----
    wc2c = vec_ref[OFF_WC2:OFF_WC2 + H, :]                              # [H, 1]
    bc2 = vec_ref[OFF_BC2:OFF_BC2 + 1, :]                               # [1, 1]
    q = jnp.sum(hc * wc2c, axis=0, keepdims=True) + bc2                 # [1, TM]

    # ---- Loss(policy_loss=-q), lane-dense store ----
    loss_ref[...] = -q


def pack_params(params):
    """One-time packing of the module parameters into the kernel layout (hoisted)."""
    H = params["w1"].shape[1]
    A = params["w2"].shape[1]
    HP, AP = _round_up(H, 8), _round_up(A, 8)

    def col(x, rows):
        v = jnp.asarray(x, jnp.float32).reshape(-1, 1)
        return jnp.pad(v, ((0, rows - v.shape[0]), (0, 0)))

    vec = jnp.concatenate([
        col(params["b1"], HP),        # rows [0, H)
        col(params["bc1"], HP),       # rows [HP, HP+H)
        col(params["b2"], AP),        # rows [2HP, 2HP+A)
        col(params["log_std"], AP),   # rows [2HP+AP, 2HP+AP+A)
        col(params["bc2"], 8),        # row  [2HP+2AP]
        col(params["wc2"], HP),       # rows [2HP+2AP+8, +H)
    ], axis=0)                        # [3HP+2AP+8, 1]

    return {
        # fuse the two state-consuming first-layer weights and transpose -> (2H, S)
        "wcatT": jnp.concatenate([params["w1"], params["wc1_s"]], axis=1).T.astype(jnp.float32),
        "w2T": params["w2"].T.astype(jnp.float32),      # (A, H)
        "wc1aT": params["wc1_a"].T.astype(jnp.float32),  # (H, A)
        "vec": vec,
    }


def pathwise_loss(state, eps, packed, *, tm=2048):
    """Fused pathwise-loss kernel. Returns policy_loss of shape [B, 1]."""
    B, S = state.shape
    A = eps.shape[1]
    wcatT, w2T, wc1aT, vec = packed["wcatT"], packed["w2T"], packed["wc1aT"], packed["vec"]
    H = wc1aT.shape[0]

    # Batch-on-lanes layout: transpose the per-call inputs (tiny [B,16]/[B,4] arrays).
    stateT = state.T.astype(jnp.float32)   # [S, B]
    epsT = eps.T.astype(jnp.float32)       # [A, B]

    if B <= tm:
        # Whole batch in a single grid step; full-extent lane block needs no padding.
        TM, Bp = B, B
    else:
        # Multi-step grid: lane tile must be a multiple of 128; pad the batch up.
        TM = max(128, (min(tm, B) // 128) * 128)
        Bp = pl.cdiv(B, TM) * TM
        if Bp != B:
            stateT = jnp.pad(stateT, ((0, 0), (0, Bp - B)))
            epsT = jnp.pad(epsT, ((0, 0), (0, Bp - B)))

    n_steps = Bp // TM
    weights = (wcatT, w2T, wc1aT, vec)

    stream = lambda rows: pl.BlockSpec((rows, TM), lambda i: (0, i))
    resident = lambda arr: pl.BlockSpec(arr.shape, lambda i: (0, 0))  # stays in VMEM

    flops = 2 * Bp * (2 * H * S + 2 * A * H + H)
    bytes_accessed = 4 * (Bp * (S + A + 1) + sum(int(w.size) for w in weights))

    out = pl.pallas_call(
        pathwise_loss_kernel,
        out_shape=jax.ShapeDtypeStruct((1, Bp), jnp.float32),
        grid_spec=pltpu.PrefetchScalarGridSpec(
            num_scalar_prefetch=0,
            grid=(n_steps,),
            in_specs=[stream(S), stream(A)] + [resident(w) for w in weights],
            out_specs=pl.BlockSpec((1, TM), lambda i: (0, i)),
        ),
        compiler_params=pltpu.CompilerParams(
            dimension_semantics=("parallel",),   # v7x: shard batch tiles over both TCs
        ),
        cost_estimate=pl.CostEstimate(
            flops=flops,
            transcendentals=Bp * 2 * H + n_steps * A,   # tanh per element, exp per tile
            bytes_accessed=bytes_accessed,
        ),
    )(stateT, epsT, *weights)

    return out[0, :B].reshape(B, 1)


def init_params(key, state_dim, action_dim, hidden):
    """Deterministic synthetic parameters (policy MLP + critic MLP)."""
    ks = jax.random.split(key, 8)
    scale = 0.1
    return {
        # policy: state -> hidden -> action mean, plus state-independent log_std
        "w1": scale * jax.random.normal(ks[0], (state_dim, hidden), jnp.float32),
        "b1": jnp.zeros((1, hidden), jnp.float32),
        "w2": scale * jax.random.normal(ks[1], (hidden, action_dim), jnp.float32),
        "b2": jnp.zeros((1, action_dim), jnp.float32),
        "log_std": jnp.full((1, action_dim), -0.5, jnp.float32),
        # critic: [state, action] -> hidden -> 1  (first layer pre-split)
        "wc1_s": scale * jax.random.normal(ks[2], (state_dim, hidden), jnp.float32),
        "wc1_a": scale * jax.random.normal(ks[3], (action_dim, hidden), jnp.float32),
        "bc1": jnp.zeros((1, hidden), jnp.float32),
        "wc2": scale * jax.random.normal(ks[4], (hidden, 1), jnp.float32),
        "bc2": jnp.zeros((1, 1), jnp.float32),
    }


def reference(state, eps, p):
    """Plain-JAX reference of the same forward pass."""
    h = jnp.tanh(state @ p["w1"] + p["b1"])
    mean = h @ p["w2"] + p["b2"]
    action = jnp.clip(mean + jnp.exp(p["log_std"]) * eps, -1.0, 1.0) * ACTION_SCALE
    hc = jnp.tanh(state @ p["wc1_s"] + action @ p["wc1_a"] + p["bc1"])
    q = hc @ p["wc2"] + p["bc2"]
    return -q


if __name__ == "__main__":
    S, A, H = 16, 4, 32  # state_dim, action_dim, hidden

    key = jax.random.PRNGKey(0)
    k_state, k_eps, k_params = jax.random.split(key, 3)
    params = init_params(k_params, S, A, H)
    packed = pack_params(params)   # one-time packing, hoisted out of the hot path

    # Main check: whole batch as one lane-dense grid step.
    B = 128
    state = jax.random.normal(k_state, (B, S), jnp.float32)
    eps = jax.random.normal(k_eps, (B, A), jnp.float32)   # rsample noise ~ N(0, 1)

    policy_loss = jax.block_until_ready(pathwise_loss(state, eps, packed))
    ref = reference(state, eps, params)
    assert policy_loss.shape == (B, 1)
    assert jnp.allclose(policy_loss, ref, atol=1e-5, rtol=1e-5)

    # Secondary check: batch not a multiple of 8/128 (full-extent single-tile path).
    B2 = 20
    state2 = jax.random.normal(jax.random.PRNGKey(1), (B2, S), jnp.float32)
    eps2 = jax.random.normal(jax.random.PRNGKey(2), (B2, A), jnp.float32)
    out2 = jax.block_until_ready(pathwise_loss(state2, eps2, packed))
    assert out2.shape == (B2, 1)
    assert jnp.allclose(out2, reference(state2, eps2, params), atol=1e-5, rtol=1e-5)

    # Tertiary check: multi-step grid with lane padding (B > tm).
    B3 = 300
    state3 = jax.random.normal(jax.random.PRNGKey(3), (B3, S), jnp.float32)
    eps3 = jax.random.normal(jax.random.PRNGKey(4), (B3, A), jnp.float32)
    out3 = jax.block_until_ready(pathwise_loss(state3, eps3, packed, tm=128))
    assert out3.shape == (B3, 1)
    assert jnp.allclose(out3, reference(state3, eps3, params), atol=1e-5, rtol=1e-5)

    # TODO(synk): NNEnsembleQFunction head-selection (q[..., 0]) and the q.dim() < 1
    # branch are not exercised with a single-head critic.
    print("KERNEL_OK")
</pallas_src>

<mosaic_0001>
module attributes {stable_mosaic.version = 11 : i64} {
  func.func @pathwise_loss_kernel(%arg0: i32, %arg1: memref<16x128xf32, #tpu.memory_space<vmem>>, %arg2: memref<4x128xf32, #tpu.memory_space<vmem>>, %arg3: memref<64x16xf32, #tpu.memory_space<vmem>>, %arg4: memref<4x32xf32, #tpu.memory_space<vmem>>, %arg5: memref<32x4xf32, #tpu.memory_space<vmem>>, %arg6: memref<120x1xf32, #tpu.memory_space<vmem>>, %arg7: memref<1x128xf32, #tpu.memory_space<vmem>>) attributes {dimension_semantics = [#tpu.dimension_semantics<parallel>], iteration_bounds = array<i64: 1>, scalar_prefetch = 0 : i64, scratch_operands = 0 : i64, tpu.core_type = #tpu.core_type<tc>, window_params = [{transform_indices = @transform_0, window_bounds = array<i64: 16, 128>}, {transform_indices = @transform_1, window_bounds = array<i64: 4, 128>}, {pipeline_mode = #tpu.pipeline_mode<synchronous>, transform_indices = @transform_2, window_bounds = array<i64: 64, 16>}, {pipeline_mode = #tpu.pipeline_mode<synchronous>, transform_indices = @transform_3, window_bounds = array<i64: 4, 32>}, {pipeline_mode = #tpu.pipeline_mode<synchronous>, transform_indices = @transform_4, window_bounds = array<i64: 32, 4>}, {pipeline_mode = #tpu.pipeline_mode<synchronous>, transform_indices = @transform_5, window_bounds = array<i64: 120, 1>}, {transform_indices = @transform_6, window_bounds = array<i64: 1, 128>}]} {
    %c0 = arith.constant 0 : index
    %c0_0 = arith.constant 0 : index
    %0 = vector.load %arg3[%c0, %c0_0] : memref<64x16xf32, #tpu.memory_space<vmem>>, vector<64x16xf32>
    %c0_1 = arith.constant 0 : index
    %c0_2 = arith.constant 0 : index
    %1 = vector.load %arg1[%c0_1, %c0_2] : memref<16x128xf32, #tpu.memory_space<vmem>>, vector<16x128xf32>
    %cst = arith.constant dense<0.000000e+00> : vector<64x128xf32>
    %2 = tpu.matmul %0, %1, %cst {dimension_numbers = #tpu.dot_dimension_numbers<[1], [0], [0], [1], [0, 0, 1, 1], [], []>} : vector<64x16xf32>, vector<16x128xf32>, vector<64x128xf32> -> vector<64x128xf32>
    %c0_3 = arith.constant 0 : index
    %c0_4 = arith.constant 0 : index
    %3 = vector.load %arg6[%c0_3, %c0_4] : memref<120x1xf32, #tpu.memory_space<vmem>>, vector<32x1xf32>
    %4 = vector.extract_strided_slice %2 {offsets = [0, 0], sizes = [32, 128], strides = [1, 1]} : vector<64x128xf32> to vector<32x128xf32>
    %5 = vector.broadcast %3 : vector<32x1xf32> to vector<32x128xf32>
    %6 = arith.addf %4, %5 : vector<32x128xf32>
    %7 = math.tanh %6 : vector<32x128xf32>
    %8 = vector.extract_strided_slice %2 {offsets = [32, 0], sizes = [32, 128], strides = [1, 1]} : vector<64x128xf32> to vector<32x128xf32>
    %c64 = arith.constant 64 : index
    %c0_5 = arith.constant 0 : index
    %9 = vector.load %arg6[%c64, %c0_5] : memref<120x1xf32, #tpu.memory_space<vmem>>, vector<4x1xf32>
    %c72 = arith.constant 72 : index
    %c0_6 = arith.constant 0 : index
    %10 = vector.load %arg6[%c72, %c0_6] : memref<120x1xf32, #tpu.memory_space<vmem>>, vector<4x1xf32>
    %c0_7 = arith.constant 0 : index
    %c0_8 = arith.constant 0 : index
    %11 = vector.load %arg4[%c0_7, %c0_8] : memref<4x32xf32, #tpu.memory_space<vmem>>, vector<4x32xf32>
    %cst_9 = arith.constant dense<0.000000e+00> : vector<4x128xf32>
    %12 = tpu.matmul %11, %7, %cst_9 {dimension_numbers = #tpu.dot_dimension_numbers<[1], [0], [0], [1], [0, 0, 1, 1], [], []>} : vector<4x32xf32>, vector<32x128xf32>, vector<4x128xf32> -> vector<4x128xf32>
    %13 = vector.broadcast %9 : vector<4x1xf32> to vector<4x128xf32>
    %14 = arith.addf %12, %13 : vector<4x128xf32>
    %15 = math.exp %10 : vector<4x1xf32>
    %c0_10 = arith.constant 0 : index
    %c0_11 = arith.constant 0 : index
    %16 = vector.load %arg2[%c0_10, %c0_11] : memref<4x128xf32, #tpu.memory_space<vmem>>, vector<4x128xf32>
    %17 = vector.broadcast %15 : vector<4x1xf32> to vector<4x128xf32>
    %18 = arith.mulf %17, %16 : vector<4x128xf32>
    %19 = arith.addf %14, %18 : vector<4x128xf32>
    %cst_12 = arith.constant -1.000000e+00 : f32
    %cst_13 = arith.constant 1.000000e+00 : f32
    %20 = vector.broadcast %cst_12 : f32 to vector<4x128xf32>
    %21 = arith.maximumf %20, %19 : vector<4x128xf32>
    %22 = vector.broadcast %cst_13 : f32 to vector<4x128xf32>
    %23 = arith.minimumf %22, %21 : vector<4x128xf32>
    %cst_14 = arith.constant 1.000000e+00 : f32
    %24 = vector.broadcast %cst_14 : f32 to vector<4x128xf32>
    %25 = arith.mulf %23, %24 : vector<4x128xf32>
    %c32 = arith.constant 32 : index
    %c0_15 = arith.constant 0 : index
    %26 = vector.load %arg6[%c32, %c0_15] : memref<120x1xf32, #tpu.memory_space<vmem>>, vector<32x1xf32>
    %c0_16 = arith.constant 0 : index
    %c0_17 = arith.constant 0 : index
    %27 = vector.load %arg5[%c0_16, %c0_17] : memref<32x4xf32, #tpu.memory_space<vmem>>, vector<32x4xf32>
    %cst_18 = arith.constant dense<0.000000e+00> : vector<32x128xf32>
    %28 = tpu.matmul %27, %25, %cst_18 {dimension_numbers = #tpu.dot_dimension_numbers<[1], [0], [0], [1], [0, 0, 1, 1], [], []>} : vector<32x4xf32>, vector<4x128xf32>, vector<32x128xf32> -> vector<32x128xf32>
    %29 = arith.addf %8, %28 : vector<32x128xf32>
    %30 = vector.broadcast %26 : vector<32x1xf32> to vector<32x128xf32>
    %31 = arith.addf %29, %30 : vector<32x128xf32>
    %32 = math.tanh %31 : vector<32x128xf32>
    %c88 = arith.constant 88 : index
    %c0_19 = arith.constant 0 : index
    %33 = vector.load %arg6[%c88, %c0_19] : memref<120x1xf32, #tpu.memory_space<vmem>>, vector<32x1xf32>
    %c80 = arith.constant 80 : index
    %c0_20 = arith.constant 0 : index
    %34 = vector.load %arg6[%c80, %c0_20] : memref<120x1xf32, #tpu.memory_space<vmem>>, vector<1x1xf32>
    %35 = vector.broadcast %33 : vector<32x1xf32> to vector<32x128xf32>
    %36 = arith.mulf %32, %35 : vector<32x128xf32>
    %cst_21 = arith.constant dense<0.000000e+00> : vector<128xf32>
    %37 = vector.multi_reduction <add>, %36, %cst_21 [0] : vector<32x128xf32> to vector<128xf32>
    %38 = vector.shape_cast %37 : vector<128xf32> to vector<1x128xf32>
    %39 = vector.broadcast %34 : vector<1x1xf32> to vector<1x128xf32>
    %40 = arith.addf %38, %39 : vector<1x128xf32>
    %cst_22 = arith.constant 0.000000e+00 : f32
    %41 = vector.broadcast %cst_22 : f32 to vector<1x128xf32>
    %42 = arith.subf %41, %40 : vector<1x128xf32>
    %c0_23 = arith.constant 0 : index
    %c0_24 = arith.constant 0 : index
    %43 = vector.load %arg7[%c0_23, %c0_24] : memref<1x128xf32, #tpu.memory_space<vmem>>, vector<1x128xf32>
    tpu.vector_store %arg7[%c0_23, %c0_24], %42 {strides = array<i32>} : memref<1x128xf32, #tpu.memory_space<vmem>>, vector<1x128xf32>,
    return
  }
  func.func @transform_0(%arg0: i32) -> (i32, i32) {
    %c0_i32 = arith.constant 0 : i32
    %c0_i32_0 = arith.constant 0 : i32
    return %c0_i32, %arg0 : i32, i32
  }
  func.func @transform_1(%arg0: i32) -> (i32, i32) {
    %c0_i32 = arith.constant 0 : i32
    %c0_i32_0 = arith.constant 0 : i32
    return %c0_i32, %arg0 : i32, i32
  }
  func.func @transform_2(%arg0: i32) -> (i32, i32) {
    %c0_i32 = arith.constant 0 : i32
    %c0_i32_0 = arith.constant 0 : i32
    %c0_i32_1 = arith.constant 0 : i32
    return %c0_i32, %c0_i32_0 : i32, i32
  }
  func.func @transform_3(%arg0: i32) -> (i32, i32) {
    %c0_i32 = arith.constant 0 : i32
    %c0_i32_0 = arith.constant 0 : i32
    %c0_i32_1 = arith.constant 0 : i32
    return %c0_i32, %c0_i32_0 : i32, i32
  }
  func.func @transform_4(%arg0: i32) -> (i32, i32) {
    %c0_i32 = arith.constant 0 : i32
    %c0_i32_0 = arith.constant 0 : i32
    %c0_i32_1 = arith.constant 0 : i32
    return %c0_i32, %c0_i32_0 : i32, i32
  }
  func.func @transform_5(%arg0: i32) -> (i32, i32) {
    %c0_i32 = arith.constant 0 : i32
    %c0_i32_0 = arith.constant 0 : i32
    %c0_i32_1 = arith.constant 0 : i32
    return %c0_i32, %c0_i32_0 : i32, i32
  }
  func.func @transform_6(%arg0: i32) -> (i32, i32) {
    %c0_i32 = arith.constant 0 : i32
    %c0_i32_0 = arith.constant 0 : i32
    return %c0_i32, %arg0 : i32, i32
  }
}

</mosaic_0001>

<bundles_post_ra>
// kernel: tpu_custom_call.1
= control target key start
LH: loop header
LB: loop body
LE: loop exit
PB: predicated region body
PF: predicated region fallthrough
CT: control target
= control target key end

     0   :  { %vm34_vm0 = vcmask 130048   ;;  %v627_v5 = vmov 0   ;;  %s784_s0 = inlined_call_operand.vmem [shape: f32[16,128], index: 0, kind: input, shape index: {}]   ;;  %s785_s1 = inlined_call_operand.vmem [shape: f32[4,128], index: 1, kind: input, shape index: {}]   ;;  %s786_s2 = inlined_call_operand.vmem [shape: f32[64,16], index: 2, kind: input, shape index: {}]   ;;  %s787_s3 = inlined_call_operand.vmem [shape: f32[4,32], index: 3, kind: input, shape index: {}]   ;;  %s788_s4 = inlined_call_operand.vmem [shape: f32[32,4], index: 4, kind: input, shape index: {}]   ;;  %s789_s5 = inlined_call_operand.vmem [shape: f32[120,1], index: 5, kind: input, shape index: {}]   ;;  %s790_s6 = inlined_call_operand.hbm [shape: f32[1,128], index: 6, kind: output, shape index: {}]  }
   0x1   :  { %v32_v0 = vld [vmem:[%s784_s0] sm:$0xff]  ;;  %v33_v1 = vld [vmem:[%s784_s0 + $0x8] sm:$0xff]  ;;  %v26_v4 = vld [vmem:[%s786_s2 + $0x10] sm:$0xff]  ;;  %583 = vset.pattern.permute.xlu0 %v627_v5  ;;  %584 = vset.pattern.permute.xlu1 %v627_v5 }
   0x2   :  { %v24_v2 = vld [vmem:[%s786_s2] sm:$0xff]  ;;  %v562_v3 = vpack.c.bf16 %v33_v1, %v32_v0  ;;  %534 = vmatprep.mubr.msk.f32.mxu1 %vm34_vm0, %v26_v4  ;;  %v166_v7 = vld [vmem:[%s789_s5 + $0x10] sm:$0xff]  ;;  %v25_v8 = vld [vmem:[%s786_s2 + $0x8] sm:$0xff] }
   0x3   :  { %531 = vmatprep.mubr.msk.f32.mxu0 %vm34_vm0, %v24_v2  ;;  %v164_v6 = vld [vmem:[%s789_s5] sm:$0xff]  ;;  %v27_v9 = vld [vmem:[%s786_s2 + $0x18] sm:$0xff]  ;;  %v197_v10 = vld [vmem:[%s789_s5 + $0x48] sm:$0xf]  ;;  %180 = vperm.xlu1 %584, %v166_v7  }
   0x4   :  { %563 = vmatprep.subr.bf16.mxu0 %v562_v3  ;;  %572 = vmatprep.subr.bf16.mxu1 %v562_v3  ;;  %v278_v11 = vmul.f32 1.442695, %v197_v10  ;;  %v165_v12 = vld [vmem:[%s789_s5 + $0x8] sm:$0xff]  ;;  %v167_v13 = vld [vmem:[%s789_s5 + $0x18] sm:$0xff] }
   0x5   :  { %565 = vmatpush3.bf16.msra.mxu0 %v562_v3  ;;  %573 = vmatpush3.bf16.msra.mxu1 %v562_v3 }
   0x6   :  { %170 = vperm.xlu0 %583, %v164_v6   ;;  %585 = vpow2.f32 %v278_v11 }
   0x8   :  { %532 = vmatmul.mubr.msk.f32.vlgmr.msra.gmra.mrb[0].mxu0 %vm34_vm0, %v25_v8  ;;  %535 = vmatmul.mubr.msk.f32.vlgmr.msra.gmra.mrb[0].mxu1 %vm34_vm0, %v27_v9 }
   0x9   :  { %11 = vsyncpa [#allocation3], 0  ;;  %185 = vperm.xlu1 %584, %v167_v13   ;;  %v196_v14 = vld [vmem:[%s789_s5 + $0x40] sm:$0xf]  ;;  %v292_v17 = vld [vmem:[%s789_s5 + $0x30] sm:$0xff]  ;;  %v628_v27 = vmov 0.0|0.0  }
   0xa   :  { %175 = vperm.xlu0 %583, %v165_v12   ;;  %v290_v15 = vld [vmem:[%s789_s5 + $0x20] sm:$0xff]  ;;  %v291_v18 = vld [vmem:[%s789_s5 + $0x28] sm:$0xff]  ;;  %v432_v19 = vld [vmem:[%s789_s5 + $0x58] sm:$0xff]  ;;  %566 = vmatprep.subr.bf16.mxu1 %v628_v27  ;;  %vm629_vm1 = vmmov 0   ;;  %v630_v30 = vmov 0.0   ;;  %vm204_vm2 = vcmask 261120  }
   0xb   :  { %v293_v20 = vld [vmem:[%s789_s5 + $0x38] sm:$0xff]  ;;  %v434_v21 = vld [vmem:[%s789_s5 + $0x68] sm:$0xff]  ;;  %v433_v22 = vld [vmem:[%s789_s5 + $0x60] sm:$0xff]  ;;  %vm298_vm3 = vcmask 31744   ;;  %vm311_vm4 = vcmask 1043456  }
   0xc   :  { %v436_v23 = vld [vmem:[%s789_s5 + $0x50] sm:$0x1]  ;;  %v28_v25 = vld [vmem:[%s786_s2 + $0x20] sm:$0xff]  ;;  %v29_v26 = vld [vmem:[%s786_s2 + $0x28] sm:$0xff] }
   0xd   :  { %v435_v24 = vld [vmem:[%s789_s5 + $0x70] sm:$0xff]  ;;  %537 = vmatprep.mubr.msk.f32.mxu1 %vm34_vm0, %v28_v25  ;;  %v31_v29 = vld [vmem:[%s786_s2 + $0x38] sm:$0xff]  ;;  %v198_v49 = vld [vmem:[%s787_s3] sm:$0xf] }
   0xe   :  { %201 = vperm.xlu0 %583, %v196_v14   ;;  %538 = vmatmul.mubr.msk.f32.gmra.mrb[2].mxu1 %vm34_vm0, %v29_v26  ;;  %v30_v28 = vld [vmem:[%s786_s2 + $0x30] sm:$0xff]  ;;  %v294_v54 = vld [vmem:[%s788_s4] sm:$0xff]  ;;  %v295_v0 = vld [vmem:[%s788_s4 + $0x8] sm:$0xff] }
   0xf   :  { %540 = vmatprep.mubr.msk.f32.mxu1 %vm34_vm0, %v30_v28  ;;  %556 = vmatprep.mubr.msk.f32.mxu0 %vm298_vm3, %v294_v54  ;;  %v280_v55 = vld [vmem:[%s785_s1] sm:$0xf]  ;;  %v296_v1 = vld [vmem:[%s788_s4 + $0x10] sm:$0xff]  ;;  %v297_v2 = vld [vmem:[%s788_s4 + $0x18] sm:$0xff]  ;;  %s631_s4 = smov [#allocation2]  }
  0x10   :  { %v586_v16 = vpop.eup %585  ;;  %s484_s29 = sshll.u32 %s631_s4, 4  ;;  %s485_s29 = int_to_ptr.vmem [resolvable:$true] %s484_s29 }
  0x11   :  { %283 = vperm.xlu1 %584, %v586_v16   ;;  %s603_s30 = scalar_lea.vmem %s485_s29, 16  ;;  %s607_s0 = scalar_lea.vmem %s485_s29, 32 }
  0x12   :  { %406 = vperm.xlu0 %583, %v290_v15   ;;  %541 = vmatmul.mubr.msk.f32.gmra.mrb[4].mxu1 %vm34_vm0, %v31_v29  ;;  %p604_p0 = scmp.ne.s32.totalorder %s485_s29, %s603_s30  ;;  %p608_p1 = scmp.lt.s32.totalorder %s485_s29, %s485_s29 }
  0x13   :  { %551 = vmatprep.mubr.msk.f32.mxu1 %vm629_vm1, %v630_v30  ;;  %p609_p2 = scmp.lt.s32.totalorder %s607_s0, %s603_s30 }
  0x15   :  { %411 = vperm.xlu1 %584, %v291_v18   ;;  %p610_p3 = por %p609_p2, %p608_p1 }
  0x16   :  { %416 = vperm.xlu0 %583, %v292_v17  }
  0x17   :  { %p611_p4 = pnand %p610_p3, %p604_p0 }
  0x19   :  { %421 = vperm.xlu1 %584, %v293_v20  }
  0x1a   :  { %439 = vperm.xlu0 %583, %v432_v19  }
  0x1d   :  { %444 = vperm.xlu1 %584, %v433_v22  }
  0x1e   :  { %449 = vperm.xlu0 %583, %v434_v21  }
  0x21   :  { %454 = vperm.xlu1 %584, %v435_v24  }
  0x22   :  { %472 = vperm.xlu0 %583, %v436_v23  }
  0x82   :  { %v181_v32 = vpop.permute.xlu1 %180 }
  0x85   :  { %v171_v31 = vpop.permute.xlu0 %170 }
  0x88   :  { %v186_v34 = vpop.permute.xlu1 %185 }
  0x89   :  { %v176_v33 = vpop.permute.xlu0 %175 }
  0x8d   :  { %v202_v56 = vpop.permute.xlu0 %201 }
  0x90   :  { %v284_v57 = vpop.permute.xlu1 %283 }
  0x91   :  { %v286_v59 = vmul.f32 %v284_v57, %v280_v55  ;;  %v407_v5 = vpop.permute.xlu0 %406 }
  0x94   :  { %v412_v3 = vpop.permute.xlu1 %411 }
  0x95   :  { %v417_v16 = vpop.permute.xlu0 %416 }
  0x98   :  { %v422_v14 = vpop.permute.xlu1 %421 }
  0x99   :  { %v440_v19 = vpop.permute.xlu0 %439 }
  0x9c   :  { %v445_v21 = vpop.permute.xlu1 %444 }
  0x9d   :  { %v450_v28 = vpop.permute.xlu0 %449 }
  0xa0   :  { %v455_v30 = vpop.permute.xlu1 %454 }
  0xdb   :  { %v533_v35 = vpop.f32.mrb[0].mxu0  ;;  %v536_v36 = vpop.f32.mrb[0].mxu1 }
  0xdc   :  { %v189_v37 = vadd.f32 %v533_v35, %v176_v33  ;;  %v125_v38 = vpop.f32.mrb[1].mxu0  ;;  %v191_v39 = vadd.f32 %v536_v36, %v186_v34  ;;  %v135_v40 = vpop.f32.mrb[1].mxu1 }
  0xdd   :  { %v188_v41 = vadd.f32 %v171_v31, %v125_v38  ;;  %v190_v42 = vadd.f32 %v181_v32, %v135_v40  ;;  %v473_v40 = vpop.permute.xlu0 %472 }
  0xde   :  { %587 = vtanh.f32 %v189_v37 }
  0xdf   :  { %589 = vtanh.f32 %v188_v41 }
  0xe0   :  { %591 = vtanh.f32 %v191_v39 }
  0xe1   :  { %593 = vtanh.f32 %v190_v42  ;;  %v539_v50 = vpop.f32.mrb[2].mxu1 }
  0xe2   :  { %v145_v51 = vpop.f32.mrb[3].mxu1 }
  0xe5   :  { %v542_v52 = vpop.f32.mrb[4].mxu1 }
  0xe6   :  { %v155_v53 = vpop.f32.mrb[5].mxu1 }
  0xe8   :  { %v588_v43 = vpop.eup %587 }
  0xe9   :  { %v590_v44 = vpop.eup %589 }
  0xea   :  { %v592_v45 = vpop.eup %591  ;;  %v567_v46 = vpack.c.bf16 %v588_v43, %v590_v44 }
  0xeb   :  { %v594_v47 = vpop.eup %593 }
  0xec   :  { %568 = vmatpush3.bf16.msra.mxu1 %v567_v46  ;;  %v570_v48 = vpack.c.bf16 %v592_v45, %v594_v47 }
  0xed   :  { %569 = vmatprep.subr.bf16.mxu1 %v628_v27 }
  0xf0   :  { %571 = vmatpush3.bf16.msra.mxu1 %v570_v48 }
  0xf3   :  { %552 = vmatmul.mubr.msk.f32.vlgmr.msra.gmra.mrb[6].mxu1 %vm204_vm2, %v198_v49 }
 0x1c6   :  { %v274_v58 = vpop.f32.mrb[6].mxu1 }
 0x1c7   :  { %v275_v60 = vadd.f32 %v274_v58, %v202_v56  ;;  %v553_v61 = vpop.f32.mrb[7].mxu1 }
 0x1c9   :  { %v287_v62 = vadd.f32 %v286_v59, %v275_v60 }
 0x1cb   :  { %v501_v63 = vclamps-f32 %v287_v62, 1.0 }
 0x1cd   :  { %554 = vmatprep.subr.msk.mxu0 %vm311_vm4, %v501_v63 }
 0x1ce   :  { %555 = vmatpush3.msk.msra.mxu0 %vm311_vm4, %v501_v63 }
 0x1cf   :  { %557 = vmatmul.mubr.msk.f32.vlgmr.msra.gmra.mrb[2].mxu0 %vm298_vm3, %v295_v0 }
 0x1d0   :  { %559 = vmatprep.mubr.msk.f32.mxu0 %vm298_vm3, %v296_v1 }
 0x1d3   :  { %560 = vmatmul.mubr.msk.f32.gmra.mrb[4].mxu0 %vm298_vm3, %v297_v2 }
 0x2a2   :  { %v558_v4 = vpop.f32.mrb[2].mxu0 }
 0x2a3   :  { %v401_v6 = vadd.f32 %v558_v4, %v539_v50  ;;  %v381_v7 = vpop.f32.mrb[3].mxu0 }
 0x2a4   :  { %v400_v8 = vadd.f32 %v381_v7, %v145_v51 }
 0x2a5   :  { %v425_v9 = vadd.f32 %v412_v3, %v401_v6 }
 0x2a6   :  { %v424_v10 = vadd.f32 %v407_v5, %v400_v8  ;;  %v561_v11 = vpop.f32.mrb[4].mxu0 }
 0x2a7   :  { %595 = vtanh.f32 %v425_v9  ;;  %v403_v12 = vadd.f32 %v561_v11, %v542_v52  ;;  %v391_v13 = vpop.f32.mrb[5].mxu0 }
 0x2a8   :  { %597 = vtanh.f32 %v424_v10  ;;  %v402_v15 = vadd.f32 %v391_v13, %v155_v53 }
 0x2a9   :  { %v427_v17 = vadd.f32 %v422_v14, %v403_v12 }
 0x2aa   :  { %v426_v18 = vadd.f32 %v417_v16, %v402_v15 }
 0x2ab   :  { %599 = vtanh.f32 %v427_v17 }
 0x2ac   :  { %601 = vtanh.f32 %v426_v18 }
 0x2b1   :  { %v596_v20 = vpop.eup %595 }
 0x2b2   :  { %v598_v22 = vpop.eup %597  ;;  %v458_v23 = vmul.f32 %v596_v20, %v445_v21 }
 0x2b3   :  { %v457_v24 = vmul.f32 %v598_v22, %v440_v19 }
 0x2b5   :  { %v600_v25 = vpop.eup %599  ;;  %v461_v26 = vadd.f32 %v458_v23, %v457_v24 }
 0x2b6   :  { %v602_v27 = vpop.eup %601  ;;  %v460_v31 = vmul.f32 %v600_v25, %v455_v30 }
 0x2b7   :  { %v459_v29 = vmul.f32 %v602_v27, %v450_v28 }
 0x2b9   :  { %v462_v32 = vadd.f32 %v461_v26, %v459_v29 }
 0x2bb   :  { %v463_v33 = vadd.f32 %v462_v32, %v460_v31 }
 0x2bd   :  { %v464_v34 = vrot.slane %v463_v33, 4 }
 0x2bf   :  { %v465_v35 = vadd.f32 %v464_v34, %v463_v33 }
 0x2c1   :  { %v466_v36 = vrot.slane %v465_v35, 2 }
 0x2c3   :  { %v467_v37 = vadd.f32 %v466_v36, %v465_v35 }
 0x2c5   :  { %v468_v38 = vrot.slane %v467_v37, 1 }
 0x2c7   :  { %v469_v39 = vadd.f32 %v468_v38, %v467_v37 }
 0x2c9   :  { %v475_v41 = vadd.f32 %v473_v40, %v469_v39 }
 0x2cb   :  { %v476_v42 = vsub.f32 0.0, %v475_v41 }
 0x2cd   :  { %477 = vst [vmem:[#allocation2] sm:$0x1] %v476_v42 }
 0x2ce   :  { %614 = shalt.err (!%p611_p4)
}
 0x2cf   :  { %s615_s9 = scalar_lea.hbm %s790_s6, 16 }
 0x2d0   :  { %p616_p5 = scmp.ne.s32.totalorder %s790_s6, %s615_s9  ;;  %p619_p6 = scmp.lt.u32.totalorder %s615_s9, %s790_s6 }
 0x2d2   :  { %p621_p7 = pnand %p619_p6, %p616_p5 }
 0x2d4   :  { %624 = shalt.err (!%p621_p7)
}
 0x2d5   :  { %487 = dma.vmem_to_hbm [thread:$0]  %s485_s29, 16, %s790_s6, [#allocation3]  }
 0x2d6   :  { %625 = dma.done.wait [#allocation3], 16  }
 0x2d7   :  { %626 = vsyncadd [#allocation3], 4294967280 }
 0x2d8   :  { %491 = vsyncpa [#allocation3], 1 }

</bundles_post_ra>
